<compile_context>
chip_gen: v6e
topology: v6e:2x2x1
jax: 0.10.0
libtpu: 0.0.40
codegen_flags: <defaults>
</compile_context>

<pallas_src>
import math
from functools import partial

import jax
import jax.numpy as jnp
from jax.experimental import pallas as pl
from jax.experimental.pallas import tpu as pltpu


def _round_up(n, m):
    return ((n + m - 1) // m) * m


def _linear_kernel(x_ref, w_ref, b_ref, o_ref, *, x_cast_dtype, precision):
    # x_ref: (tm, E), w_ref: (E, tn), b_ref: (1, tn), o_ref: (tm, tn)
    x = x_ref[...]
    if x_cast_dtype is not None and x.dtype != x_cast_dtype:
        x = x.astype(x_cast_dtype)          # tiny (tm, E) cast; weight is stored pre-cast
    acc = jnp.dot(x, w_ref[...],
                  preferred_element_type=jnp.float32,
                  precision=precision)       # MXU, f32 accumulation
    o_ref[...] = (acc + b_ref[...].astype(jnp.float32)).astype(o_ref.dtype)


def prepare_classifier_params(weight, bias, *, weight_dtype=jnp.bfloat16, lane=128):
    """One-time parameter prep (do NOT call per forward step).

    weight: [O, E] (PyTorch nn.Linear layout), bias: [O]
    Returns: w_t [E, O_pad] pre-transposed, zero-padded, stored in `weight_dtype`
             (bf16 by default: halves weight DMA + bf16 MXU path),
             b2d [1, O_pad] in f32 (exact f32 bias epilogue).
    """
    out_dim, embed_dim = weight.shape
    o_pad = _round_up(out_dim, lane)
    w_t = jnp.zeros((embed_dim, o_pad), weight_dtype)
    w_t = w_t.at[:, :out_dim].set(weight.T.astype(weight_dtype))
    b2d = jnp.zeros((1, o_pad), jnp.float32).at[:, :out_dim].set(bias.astype(jnp.float32))
    # TODO(synk): optional int8 weight storage + f32 dequant-scale epilogue for v5e.
    return w_t, b2d


def classifier_forward(x, w_t, b2d, output_dim, *, tm_max=512, tn_max=512,
                       vmem_budget_bytes=24 << 20):
    """x: [B, E]; w_t: [E, O_pad]; b2d: [1, O_pad] (from prepare_classifier_params).

    Returns y: [B, output_dim] == x @ W^T + b.
    """
    B, E = x.shape
    e_w, O_pad = w_t.shape
    assert e_w == E and O_pad % 128 == 0 and b2d.shape == (1, O_pad)

    x_item = jnp.dtype(x.dtype).itemsize
    w_item = jnp.dtype(w_t.dtype).itemsize
    out_dtype = x.dtype
    out_item = jnp.dtype(out_dtype).itemsize

    # ---- M tiling: choose tm dividing round_up(B, 8) so the batch-pad copy of x
    # is only needed when B itself is not a multiple of 8.
    B8 = _round_up(B, 8)
    if B8 <= tm_max:
        tm = B8
    else:
        tm = 8
        for t in (tm_max, 256, 128, 64, 32, 16, 8):
            if t <= tm_max and B8 % t == 0:
                tm = t
                break
    Bp = _round_up(B, tm)            # == round_up(B, 8) by construction
    m_tiles = Bp // tm

    # ---- N tiling: largest lane-multiple tile dividing O_pad.  If the M axis is
    # a single tile, require >=2 N tiles (when possible) so both v7x TensorCores
    # participate; neutral on v5e/v6e.
    want_min_n = 2 if m_tiles == 1 else 1
    tn = 128
    t = 128
    while t <= min(tn_max, O_pad):
        if O_pad % t == 0 and O_pad // t >= want_min_n:
            tn = t
        t += 128

    # ---- VMEM budget check (double-buffered tiles); shrink tiles if oversized.
    def vmem_est(tm_, tn_):
        return 2 * (tm_ * E * x_item + E * tn_ * w_item + tn_ * 4 + tm_ * tn_ * out_item)

    while vmem_est(tm, tn) > vmem_budget_bytes and tn > 128:
        half = tn // 2
        tn = half if (half % 128 == 0 and O_pad % half == 0) else 128
    while vmem_est(tm, tn) > vmem_budget_bytes and tm > 8:
        tm = max(8, (tm // 2 // 8) * 8)
        Bp = _round_up(B, tm)
        m_tiles = Bp // tm

    n_tiles = O_pad // tn

    # ---- Batch padding only when strictly required (B not a multiple of 8 or
    # tm does not divide B).
    if Bp != B:
        x = jnp.zeros((Bp, E), x.dtype).at[:B, :].set(x)

    # ---- Kernel config: weight is already stored in its compute dtype; only a
    # tiny per-tile cast of x remains (when mixing f32 x with bf16 weights).
    x_cast_dtype = (jnp.bfloat16
                    if (w_t.dtype == jnp.bfloat16 and x.dtype != jnp.bfloat16)
                    else None)
    precision = (jax.lax.Precision.HIGHEST
                 if (w_t.dtype == jnp.float32 and x.dtype == jnp.float32)
                 else None)
    kernel = partial(_linear_kernel, x_cast_dtype=x_cast_dtype, precision=precision)

    # ---- Accurate traffic estimate: W streamed exactly once, x re-read once per
    # outer N tile, each operand billed at its own dtype.
    cost = pl.CostEstimate(
        flops=2 * Bp * E * O_pad,
        transcendentals=0,
        bytes_accessed=(n_tiles * Bp * E * x_item
                        + E * O_pad * w_item
                        + O_pad * 4
                        + Bp * O_pad * out_item),
    )

    vmem_limit = int(min(max(vmem_est(tm, tn) + (4 << 20), 16 << 20), 64 << 20))

    out = pl.pallas_call(
        kernel,
        out_shape=jax.ShapeDtypeStruct((Bp, O_pad), out_dtype),
        grid_spec=pl.GridSpec(
            # N outer, M inner (row-major iteration) -> weight block index is
            # constant across the inner axis: W is DMA'd from HBM exactly once.
            grid=(n_tiles, m_tiles),
            in_specs=[
                pl.BlockSpec((tm, E), lambda j, i: (i, 0)),   # x tile (inner axis only)
                pl.BlockSpec((E, tn), lambda j, i: (0, j)),   # weight tile (outer axis only)
                pl.BlockSpec((1, tn), lambda j, i: (0, j)),   # bias tile
            ],
            out_specs=pl.BlockSpec((tm, tn), lambda j, i: (i, j)),
        ),
        compiler_params=pltpu.CompilerParams(
            dimension_semantics=("parallel", "parallel"),
            vmem_limit_bytes=vmem_limit,
        ),
        cost_estimate=cost,
    )(x, w_t, b2d)

    return out[:B, :output_dim]


def init_classifier_params(key, embed_dim, output_dim):
    """Deterministic init mirroring the PyTorch module's __init__:
       weight: kaiming_uniform_(mode='fan_in', nonlinearity='relu')
       bias:   nn.Linear default U(-1/sqrt(fan_in), 1/sqrt(fan_in))."""
    k_w, k_b = jax.random.split(key)
    fan_in = embed_dim
    gain = math.sqrt(2.0)  # relu gain
    bound_w = gain * math.sqrt(3.0 / fan_in)
    weight = jax.random.uniform(
        k_w, (output_dim, embed_dim), jnp.float32, -bound_w, bound_w
    )
    bound_b = 1.0 / math.sqrt(fan_in)
    bias = jax.random.uniform(
        k_b, (output_dim,), jnp.float32, -bound_b, bound_b
    )
    return weight, bias


if __name__ == "__main__":
    key = jax.random.PRNGKey(0)
    k_x, k_p = jax.random.split(key)

    batch = 8
    embed_dim = 32
    output_dim = 16

    x = jax.random.normal(k_x, (batch, embed_dim), jnp.float32)
    weight, bias = init_classifier_params(k_p, embed_dim, output_dim)

    y_ref = x @ weight.T + bias

    # Default path: bf16-stored weights (halved weight DMA, bf16 MXU), f32 accumulate.
    w_bf16, b2d = prepare_classifier_params(weight, bias)            # weight_dtype=bf16
    y = classifier_forward(x, w_bf16, b2d, output_dim)
    y = jax.block_until_ready(y)
    assert y.shape == (batch, output_dim)
    assert jnp.allclose(y, y_ref, atol=5e-2, rtol=5e-2)

    # Exact f32 path (precision=HIGHEST on the MXU dot).
    w_f32, b2d_f32 = prepare_classifier_params(weight, bias, weight_dtype=jnp.float32)
    y_f32 = classifier_forward(x, w_f32, b2d_f32, output_dim)
    y_f32 = jax.block_until_ready(y_f32)
    assert jnp.allclose(y_f32, y_ref, atol=1e-5, rtol=1e-5)

    print("KERNEL_OK")
</pallas_src>

<mosaic_0001>
module attributes {stable_mosaic.version = 11 : i64} {
  func.func @_linear_kernel(%arg0: i32, %arg1: i32, %arg2: memref<8x32xf32, #tpu.memory_space<vmem>>, %arg3: memref<32x128xbf16, #tpu.memory_space<vmem>>, %arg4: memref<1x128xf32, #tpu.memory_space<vmem>>, %arg5: memref<8x128xf32, #tpu.memory_space<vmem>>) attributes {dimension_semantics = [#tpu.dimension_semantics<parallel>, #tpu.dimension_semantics<parallel>], iteration_bounds = array<i64: 1, 1>, scalar_prefetch = 0 : i64, scratch_operands = 0 : i64, tpu.core_type = #tpu.core_type<tc>, window_params = [{transform_indices = @transform_0, window_bounds = array<i64: 8, 32>}, {transform_indices = @transform_1, window_bounds = array<i64: 32, 128>}, {transform_indices = @transform_2, window_bounds = array<i64: 1, 128>}, {transform_indices = @transform_3, window_bounds = array<i64: 8, 128>}]} {
    %c0 = arith.constant 0 : index
    %c0_0 = arith.constant 0 : index
    %0 = vector.load %arg2[%c0, %c0_0] : memref<8x32xf32, #tpu.memory_space<vmem>>, vector<8x32xf32>
    %1 = arith.truncf %0 : vector<8x32xf32> to vector<8x32xbf16>
    %c0_1 = arith.constant 0 : index
    %c0_2 = arith.constant 0 : index
    %2 = vector.load %arg3[%c0_1, %c0_2] : memref<32x128xbf16, #tpu.memory_space<vmem>>, vector<32x128xbf16>
    %cst = arith.constant dense<0.000000e+00> : vector<8x128xf32>
    %3 = tpu.matmul %1, %2, %cst {dimension_numbers = #tpu.dot_dimension_numbers<[1], [0], [0], [1], [0, 0, 1, 1], [], []>} : vector<8x32xbf16>, vector<32x128xbf16>, vector<8x128xf32> -> vector<8x128xf32>
    %c0_3 = arith.constant 0 : index
    %c0_4 = arith.constant 0 : index
    %4 = vector.load %arg4[%c0_3, %c0_4] : memref<1x128xf32, #tpu.memory_space<vmem>>, vector<1x128xf32>
    %5 = vector.broadcast %4 : vector<1x128xf32> to vector<8x128xf32>
    %6 = arith.addf %3, %5 : vector<8x128xf32>
    %c0_5 = arith.constant 0 : index
    %c0_6 = arith.constant 0 : index
    %7 = vector.load %arg5[%c0_5, %c0_6] : memref<8x128xf32, #tpu.memory_space<vmem>>, vector<8x128xf32>
    tpu.vector_store %arg5[%c0_5, %c0_6], %6 {strides = array<i32>} : memref<8x128xf32, #tpu.memory_space<vmem>>, vector<8x128xf32>,
    return
  }
  func.func @transform_0(%arg0: i32, %arg1: i32) -> (i32, i32) {
    %c0_i32 = arith.constant 0 : i32
    %c0_i32_0 = arith.constant 0 : i32
    return %arg1, %c0_i32 : i32, i32
  }
  func.func @transform_1(%arg0: i32, %arg1: i32) -> (i32, i32) {
    %c0_i32 = arith.constant 0 : i32
    %c0_i32_0 = arith.constant 0 : i32
    return %c0_i32, %arg0 : i32, i32
  }
  func.func @transform_2(%arg0: i32, %arg1: i32) -> (i32, i32) {
    %c0_i32 = arith.constant 0 : i32
    %c0_i32_0 = arith.constant 0 : i32
    return %c0_i32, %arg0 : i32, i32
  }
  func.func @transform_3(%arg0: i32, %arg1: i32) -> (i32, i32) {
    %c0_i32 = arith.constant 0 : i32
    return %arg1, %arg0 : i32, i32
  }
}

</mosaic_0001>

<bundles_post_ra>
// kernel: tpu_custom_call.1
= control target key start
LH: loop header
LB: loop body
LE: loop exit
PB: predicated region body
PF: predicated region fallthrough
CT: control target
= control target key end

     0   :  { %8 = vsyncpa [#allocation3], 0  ;;  %s257_s0 = inlined_call_operand.hbm [shape: f32[8,32], index: 0, kind: input, shape index: {}]   ;;  %s258_s1 = inlined_call_operand.hbm [shape: bf16[32,128], index: 1, kind: input, shape index: {}]   ;;  %s259_s2 = inlined_call_operand.vmem [shape: f32[1,128], index: 2, kind: input, shape index: {}]   ;;  %s260_s3 = inlined_call_operand.hbm [shape: f32[8,128], index: 3, kind: output, shape index: {}]  }
   0x1   :  { %9 = vsyncpa [#allocation6], 0 }
   0x2   :  { %10 = vsyncpa [#allocation4], 0  ;;  %s218_s12 = smov [#allocation2]   ;;  %s219_s14 = smov [#allocation5]  }
   0x3   :  { %s17_s13 = sshll.u32 %s218_s12, 4  ;;  %s26_s15 = sshll.u32 %s219_s14, 4  ;;  %s18_s13 = int_to_ptr.vmem [resolvable:$true] %s17_s13  ;;  %s27_s15 = int_to_ptr.vmem [resolvable:$true] %s26_s15 }
   0x4   :  { %s160_s16 = scalar_lea.vmem %s18_s13, 128  ;;  %p165_p1 = scmp.lt.s32.totalorder %s18_s13, %s18_s13 }
   0x5   :  { %p161_p0 = scmp.ne.s32.totalorder %s18_s13, %s160_s16  ;;  %p166_p2 = scmp.lt.s32.totalorder %s160_s16, %s160_s16 }
   0x7   :  { %p167_p3 = por %p166_p2, %p165_p1 }
   0x9   :  { %p168_p4 = pnand %p167_p3, %p161_p0 }
   0xb   :  { %171 = shalt.err (!%p168_p4)
}
   0xc   :  { %20 = dma.hbm_to_vmem [thread:$0]  %s257_s0, 128, %s18_s13, [#allocation3]  }
   0xd   :  { %s180_s19 = scalar_lea.vmem %s27_s15, 256  ;;  %p185_p6 = scmp.lt.s32.totalorder %s27_s15, %s27_s15 }
   0xe   :  { %p181_p5 = scmp.ne.s32.totalorder %s27_s15, %s180_s19  ;;  %p186_p7 = scmp.lt.s32.totalorder %s180_s19, %s180_s19 }
  0x10   :  { %p187_p8 = por %p186_p7, %p185_p6 }
  0x12   :  { %p188_p9 = pnand %p187_p8, %p181_p5 }
  0x14   :  { %191 = shalt.err (!%p188_p9)
}
  0x15   :  { %s220_s20 = smov 64   ;;  %s221_s21 = smov 4  }
  0x16   :  { %32 = dma.hbm_to_vmem [thread:$0]  %s258_s1, 256, %s27_s15, [#allocation6], %s220_s20, %s220_s20, %s221_s21  }
  0x17   :  { %212 = dma.done.wait [#allocation3], 128  }
  0x18   :  { %213 = vsyncadd [#allocation3], 4294967168 }
  0x19   :  { %214 = dma.done.wait [#allocation6], 256  }
  0x1a   :  { %215 = vsyncadd [#allocation6], 4294967040  ;;  %v222_v0 = vmov 0.0   ;;  %vm223_vm0 = vmmov 0   ;;  %v150_v1 = vld [vmem:[#allocation5 + $0x8] sm:$0xff]   ;;  %v151_v2 = vld [vmem:[#allocation5] sm:$0xff]  }
  0x1b   :  { %135 = vmatprep.subr.bf16.mxu0 %v222_v0  ;;  %139 = vmatprep.mubr.msk.bf16.mxu0 %vm223_vm0, %v222_v0  ;;  %v42_v3 = vld [vmem:[#allocation2] sm:$0xff]  ;;  %vm67_vm1 = vcmask 261120   ;;  %s224_s1 = smov [#allocation7]  }
  0x1c   :  { %136 = vmatpush3.bf16.msra.mxu0 %v150_v1  ;;  %v43_v4 = vpack.c.bf16 %v42_v3, %v42_v3  ;;  %v128_v5 = vld [vmem:[%s259_s2] ss:$0 sm:$0xff]  ;;  %s118_s25 = sshll.u32 %s224_s1, 4  ;;  %s119_s25 = int_to_ptr.vmem [resolvable:$true] %s118_s25 }
  0x1d   :  { %137 = vmatprep.subr.bf16.mxu0 %v222_v0  ;;  %s192_s26 = scalar_lea.vmem %s119_s25, 128  ;;  %p197_p11 = scmp.lt.s32.totalorder %s119_s25, %s119_s25 }
  0x1e   :  { %p193_p10 = scmp.ne.s32.totalorder %s119_s25, %s192_s26  ;;  %p198_p12 = scmp.lt.s32.totalorder %s192_s26, %s192_s26 }
  0x20   :  { %138 = vmatpush3.bf16.msra.mxu0 %v151_v2  ;;  %p199_p13 = por %p198_p12, %p197_p11 }
  0x22   :  { %p200_p0 = pnand %p199_p13, %p193_p10 }
  0x23   :  { %140 = vmatmul.mubr.msk.bf16.vlgmr.msra.gmra.mxu0 %vm67_vm1, %v43_v4 }
  0xe3   :  { %v105_v6 = vpop.f32.mrf.mxu0 }
  0xe4   :  { %v106_v7 = vadd.f32 %v128_v5, %v105_v6 }
  0xe5   :  { %v141_v8 = vpop.f32.mrf.mxu0 }
  0xe6   :  { %111 = vst [vmem:[#allocation7] sm:$0xff] %v106_v7 }
  0xe7   :  { %v108_v9 = vpop.f32.mrf.mxu0 }
  0xe8   :  { %203 = shalt.err (!%p200_p0)
}
  0xe9   :  { %121 = dma.vmem_to_hbm [thread:$0]  %s119_s25, 128, %s260_s3, [#allocation4]   ;;  %v142_v10 = vpop.f32.mrf.mxu0 }
  0xea   :  { %216 = dma.done.wait [#allocation4], 128  }
  0xeb   :  { %217 = vsyncadd [#allocation4], 4294967168 }
  0xec   :  { %125 = vsyncpa [#allocation3], 1 }
  0xed   :  { %126 = vsyncpa [#allocation6], 1 }
  0xee   :  { %127 = vsyncpa [#allocation4], 1 }

</bundles_post_ra>
